<compile_context>
chip_gen: v7x
topology: tpu7x:2x2x1
jax: 0.10.0
libtpu: 0.0.40
codegen_flags: <defaults>
</compile_context>

<pallas_src>
import jax
import jax.numpy as jnp
import numpy as np
from jax.experimental import pallas as pl
from jax.experimental.pallas import tpu as pltpu

LANES = 128
ACC_BUDGET_BYTES = 128 * 1024   # keep the f32 accumulator tile <= ~32 vregs


def _round_up(x, m):
    return (x + m - 1) // m * m


def _pick_row_tile(oh, ow, c_out_p):
    """Largest divisor of `oh` whose f32 accumulator (TOH*OW, C_out_p) fits the
    vreg budget; prefer tiles with TOH*OW a multiple of 8 (unmasked sublanes)."""
    max_rows = max(1, ACC_BUDGET_BYTES // (ow * c_out_p * 4))
    max_rows = min(max_rows, oh)
    divs = [t for t in range(1, max_rows + 1) if oh % t == 0]
    pref = [t for t in divs if (t * ow) % 8 == 0]
    return (pref or divs)[-1]


def _make_conv_kernel(toh, ow, stride, kh, kw, c_in, c_out_p):
    """General KHxKW path: whole padded image per batch elem, in-kernel im2col,
    one fused MXU matmul with K = KH*KW*C_in."""
    band_h = (toh - 1) * stride + kh
    m = toh * ow
    k = kh * kw * c_in

    def kernel(x_ref, w_ref, b_ref, o_ref):
        # x_ref: (1, H_p, W_p, C_in)    bf16  full padded image of batch elem b
        # w_ref: (K, C_out_p)           bf16  im2col-fused weight, K = KH*KW*C_in
        # b_ref: (1, C_out_p)           f32
        # o_ref: (1, TOH, OW, C_out_p)  bf16  lane-dense output tile
        t = pl.program_id(1)
        row0 = pl.multiple_of(t * (toh * stride), toh * stride)
        band = x_ref[0, pl.ds(row0, band_h), :, :]              # (band_h, W_p, C_in)

        # Build the (M, K) patch matrix once per tile (static unroll over taps),
        # then a single MXU matmul with f32 accumulation.
        parts = []
        for i in range(kh):
            rows = band[i:i + (toh - 1) * stride + 1:stride, :, :]      # (TOH, W_p, C_in)
            for j in range(kw):
                parts.append(rows[:, j:j + (ow - 1) * stride + 1:stride, :])
        patches = parts[0] if len(parts) == 1 else jnp.concatenate(parts, axis=-1)
        patches = patches.reshape(m, k)                                  # (M, K) bf16

        acc = jnp.dot(patches, w_ref[...], preferred_element_type=jnp.float32)
        y = jnp.maximum(acc + b_ref[...], 0.0)                           # bias + ReLU (f32)
        o_ref[...] = y.reshape(1, toh, ow, c_out_p).astype(o_ref.dtype)

    return kernel


def _make_conv1x1_kernel(toh, ow, c_in, c_out_p):
    """kh==kw==1, stride==1 fast path: row tiles streamed by BlockSpec (no halo)."""
    m = toh * ow

    def kernel(x_ref, w_ref, b_ref, o_ref):
        # x_ref: (1, TOH, OW, C_in) bf16 streamed input tile
        patches = x_ref[...].reshape(m, c_in)
        acc = jnp.dot(patches, w_ref[...], preferred_element_type=jnp.float32)
        y = jnp.maximum(acc + b_ref[...], 0.0)
        o_ref[...] = y.reshape(1, toh, ow, c_out_p).astype(o_ref.dtype)

    return kernel


def basic_conv2d_nhwc(x_nhwc, conv_w, conv_b, *, stride=1, padding=0):
    """ReLU(Conv2d(x)) on NHWC input; returns (N, OH, OW, C_out) bf16."""
    n, h, w, c_in = x_nhwc.shape
    c_out, c_in_w, kh, kw = conv_w.shape
    assert c_in_w == c_in  # TODO(synk): groups != 1 not supported
    oh = (h + 2 * padding - kh) // stride + 1
    ow = (w + 2 * padding - kw) // stride + 1
    c_out_p = _round_up(c_out, LANES)
    toh = _pick_row_tile(oh, ow, c_out_p)
    h_p, w_p = h + 2 * padding, w + 2 * padding
    k_dim = kh * kw * c_in

    # ---- layout plumbing (amortized across layers when staying NHWC/bf16) ----
    x_pad = x_nhwc.astype(jnp.bfloat16)
    if padding:
        x_pad = jnp.pad(x_pad, ((0, 0), (padding, padding), (padding, padding), (0, 0)))
    # (C_out, C_in, KH, KW) -> (KH, KW, C_in, C_out) -> (KH*KW*C_in, C_out_p):
    # im2col-fused weight; K ordering (i, j, c) matches the in-kernel patch build.
    w_r = jnp.transpose(conv_w, (2, 3, 1, 0)).reshape(k_dim, c_out)
    w_r = jnp.pad(w_r, ((0, 0), (0, c_out_p - c_out))).astype(jnp.bfloat16)
    b_r = jnp.pad(conv_b, (0, c_out_p - c_out)).reshape(1, c_out_p).astype(jnp.float32)

    grid = (n, oh // toh)
    use_1x1 = (kh == 1 and kw == 1 and stride == 1)

    if use_1x1:
        kernel = _make_conv1x1_kernel(toh, ow, c_in, c_out_p)
        x_spec = pl.BlockSpec((1, toh, ow, c_in), lambda b, t: (b, t, 0, 0))
        x_blk_bytes = toh * ow * c_in * 2
    else:
        kernel = _make_conv_kernel(toh, ow, stride, kh, kw, c_in, c_out_p)
        x_spec = pl.BlockSpec((1, h_p, w_p, c_in), lambda b, t: (b, 0, 0, 0))
        x_blk_bytes = h_p * w_p * c_in * 2

    w_spec = pl.BlockSpec((k_dim, c_out_p), lambda b, t: (0, 0))
    b_spec = pl.BlockSpec((1, c_out_p), lambda b, t: (0, 0))
    o_spec = pl.BlockSpec((1, toh, ow, c_out_p), lambda b, t: (b, t, 0, 0))

    # VMEM budget from actual block footprints (pipeline double-buffers each
    # operand; bf16 x/w/out, f32 bias, no accumulator term) with 2x slack.
    blk_bytes = 2 * (x_blk_bytes
                     + k_dim * c_out_p * 2
                     + c_out_p * 4
                     + toh * ow * c_out_p * 2)
    vmem_limit = min(max(8 << 20, 2 * blk_bytes), 64 << 20)

    out_padded = pl.pallas_call(
        kernel,
        out_shape=jax.ShapeDtypeStruct((n, oh, ow, c_out_p), jnp.bfloat16),
        grid=grid,
        in_specs=[x_spec, w_spec, b_spec],
        out_specs=o_spec,
        compiler_params=pltpu.CompilerParams(
            dimension_semantics=("parallel", "parallel"),
            vmem_limit_bytes=vmem_limit),
    )(x_pad, w_r, b_r)

    # Slice off the lane padding (stays NHWC bf16 for chaining layers).
    return out_padded[..., :c_out]


def basic_conv2d_forward(x_nchw, conv_w, conv_b, *, stride=1, padding=0):
    """PyTorch-parity entry point: NCHW f32 in, NCHW f32 out."""
    x_nhwc = jnp.transpose(x_nchw, (0, 2, 3, 1))
    y = basic_conv2d_nhwc(x_nhwc, conv_w, conv_b, stride=stride, padding=padding)
    return jnp.transpose(y, (0, 3, 1, 2)).astype(jnp.float32)


if __name__ == "__main__":
    # BasicConv2d(4, 32, kernel_size=3, padding=1) at small shapes.
    N, C_IN, H, W = 2, 4, 16, 16
    C_OUT, K, PAD, STRIDE = 32, 3, 1, 1

    key = jax.random.PRNGKey(0)
    kx, kw3, kb3, kw1, kb1 = jax.random.split(key, 5)
    x = jax.random.normal(kx, (N, C_IN, H, W), jnp.float32)
    w3 = jax.random.normal(kw3, (C_OUT, C_IN, K, K), jnp.float32) * 0.1
    b3 = jax.random.normal(kb3, (C_OUT,), jnp.float32) * 0.1

    out = basic_conv2d_forward(x, w3, b3, stride=STRIDE, padding=PAD)
    out = jax.block_until_ready(out)

    # ---- pure-JAX f32 reference: Conv2d + bias + ReLU ----
    hp = jax.lax.Precision.HIGHEST
    ref = jax.lax.conv_general_dilated(
        x, w3, window_strides=(STRIDE, STRIDE),
        padding=((PAD, PAD), (PAD, PAD)),
        dimension_numbers=("NCHW", "OIHW", "NCHW"), precision=hp)
    ref = jnp.maximum(ref + b3[None, :, None, None], 0.0)
    assert out.shape == ref.shape == (N, C_OUT, H, W)
    # tolerance covers bf16 quantization of the matmul operands + bf16 output store
    np.testing.assert_allclose(np.asarray(out), np.asarray(ref), rtol=2e-2, atol=2e-2)

    # Also exercise the 1x1 fast path: BasicConv2d(4, 32, kernel_size=1).
    w1 = jax.random.normal(kw1, (C_OUT, C_IN, 1, 1), jnp.float32) * 0.1
    b1 = jax.random.normal(kb1, (C_OUT,), jnp.float32) * 0.1
    out1 = jax.block_until_ready(basic_conv2d_forward(x, w1, b1))
    ref1 = jax.lax.conv_general_dilated(
        x, w1, window_strides=(1, 1), padding="VALID",
        dimension_numbers=("NCHW", "OIHW", "NCHW"), precision=hp)
    ref1 = jnp.maximum(ref1 + b1[None, :, None, None], 0.0)
    np.testing.assert_allclose(np.asarray(out1), np.asarray(ref1), rtol=2e-2, atol=2e-2)

    print("KERNEL_OK")
</pallas_src>

<mosaic_0001>
module attributes {stable_mosaic.version = 11 : i64} {
  func.func @kernel(%arg0: i32, %arg1: i32, %arg2: memref<1x18x18x4xbf16, #tpu.memory_space<vmem>>, %arg3: memref<36x128xbf16, #tpu.memory_space<vmem>>, %arg4: memref<1x128xf32, #tpu.memory_space<vmem>>, %arg5: memref<1x16x16x128xbf16, #tpu.memory_space<vmem>>) attributes {dimension_semantics = [#tpu.dimension_semantics<parallel>, #tpu.dimension_semantics<parallel>], iteration_bounds = array<i64: 2, 1>, scalar_prefetch = 0 : i64, scratch_operands = 0 : i64, tpu.core_type = #tpu.core_type<tc>, window_params = [{transform_indices = @transform_0, window_bounds = array<i64: 1, 18, 18, 4>}, {pipeline_mode = #tpu.pipeline_mode<synchronous>, transform_indices = @transform_1, window_bounds = array<i64: 36, 128>}, {pipeline_mode = #tpu.pipeline_mode<synchronous>, transform_indices = @transform_2, window_bounds = array<i64: 1, 128>}, {transform_indices = @transform_3, window_bounds = array<i64: 1, 16, 16, 128>}]} {
    %c16_i32 = arith.constant 16 : i32
    %0 = arith.muli %arg1, %c16_i32 : i32
    %1 = tpu.assume_multiple %0, 16 : i32
    %c0 = arith.constant 0 : index
    %2 = arith.index_cast %1 : i32 to index
    %c0_0 = arith.constant 0 : index
    %c0_1 = arith.constant 0 : index
    %3 = vector.load %arg2[%c0, %2, %c0_0, %c0_1] : memref<1x18x18x4xbf16, #tpu.memory_space<vmem>>, vector<1x18x18x4xbf16>
    %4 = vector.shape_cast %3 : vector<1x18x18x4xbf16> to vector<18x18x4xbf16>
    %5 = vector.extract_strided_slice %4 {offsets = [0, 0, 0], sizes = [16, 18, 4], strides = [1, 1, 1]} : vector<18x18x4xbf16> to vector<16x18x4xbf16>
    %6 = vector.extract_strided_slice %5 {offsets = [0, 0, 0], sizes = [16, 16, 4], strides = [1, 1, 1]} : vector<16x18x4xbf16> to vector<16x16x4xbf16>
    %7 = vector.extract_strided_slice %5 {offsets = [0, 1, 0], sizes = [16, 16, 4], strides = [1, 1, 1]} : vector<16x18x4xbf16> to vector<16x16x4xbf16>
    %8 = vector.extract_strided_slice %5 {offsets = [0, 2, 0], sizes = [16, 16, 4], strides = [1, 1, 1]} : vector<16x18x4xbf16> to vector<16x16x4xbf16>
    %9 = vector.extract_strided_slice %4 {offsets = [1, 0, 0], sizes = [16, 18, 4], strides = [1, 1, 1]} : vector<18x18x4xbf16> to vector<16x18x4xbf16>
    %10 = vector.extract_strided_slice %9 {offsets = [0, 0, 0], sizes = [16, 16, 4], strides = [1, 1, 1]} : vector<16x18x4xbf16> to vector<16x16x4xbf16>
    %11 = vector.extract_strided_slice %9 {offsets = [0, 1, 0], sizes = [16, 16, 4], strides = [1, 1, 1]} : vector<16x18x4xbf16> to vector<16x16x4xbf16>
    %12 = vector.extract_strided_slice %9 {offsets = [0, 2, 0], sizes = [16, 16, 4], strides = [1, 1, 1]} : vector<16x18x4xbf16> to vector<16x16x4xbf16>
    %13 = vector.extract_strided_slice %4 {offsets = [2, 0, 0], sizes = [16, 18, 4], strides = [1, 1, 1]} : vector<18x18x4xbf16> to vector<16x18x4xbf16>
    %14 = vector.extract_strided_slice %13 {offsets = [0, 0, 0], sizes = [16, 16, 4], strides = [1, 1, 1]} : vector<16x18x4xbf16> to vector<16x16x4xbf16>
    %15 = vector.extract_strided_slice %13 {offsets = [0, 1, 0], sizes = [16, 16, 4], strides = [1, 1, 1]} : vector<16x18x4xbf16> to vector<16x16x4xbf16>
    %16 = vector.extract_strided_slice %13 {offsets = [0, 2, 0], sizes = [16, 16, 4], strides = [1, 1, 1]} : vector<16x18x4xbf16> to vector<16x16x4xbf16>
    %17 = tpu.concatenate %6, %7, %8, %10, %11, %12, %14, %15, %16 in 2 : vector<16x16x4xbf16>, vector<16x16x4xbf16>, vector<16x16x4xbf16>, vector<16x16x4xbf16>, vector<16x16x4xbf16>, vector<16x16x4xbf16>, vector<16x16x4xbf16>, vector<16x16x4xbf16>, vector<16x16x4xbf16> -> vector<16x16x36xbf16>
    %18 = vector.shape_cast %17 : vector<16x16x36xbf16> to vector<256x36xbf16>
    %c0_2 = arith.constant 0 : index
    %c0_3 = arith.constant 0 : index
    %19 = vector.load %arg3[%c0_2, %c0_3] : memref<36x128xbf16, #tpu.memory_space<vmem>>, vector<36x128xbf16>
    %cst = arith.constant dense<0.000000e+00> : vector<256x128xf32>
    %20 = tpu.matmul %18, %19, %cst {dimension_numbers = #tpu.dot_dimension_numbers<[1], [0], [0], [1], [0, 0, 1, 1], [], []>} : vector<256x36xbf16>, vector<36x128xbf16>, vector<256x128xf32> -> vector<256x128xf32>
    %c0_4 = arith.constant 0 : index
    %c0_5 = arith.constant 0 : index
    %21 = vector.load %arg4[%c0_4, %c0_5] : memref<1x128xf32, #tpu.memory_space<vmem>>, vector<1x128xf32>
    %22 = vector.broadcast %21 : vector<1x128xf32> to vector<256x128xf32>
    %23 = arith.addf %20, %22 : vector<256x128xf32>
    %cst_6 = arith.constant 0.000000e+00 : f32
    %24 = vector.broadcast %cst_6 : f32 to vector<256x128xf32>
    %25 = arith.maximumf %23, %24 : vector<256x128xf32>
    %26 = vector.shape_cast %25 : vector<256x128xf32> to vector<1x16x16x128xf32>
    %27 = arith.truncf %26 : vector<1x16x16x128xf32> to vector<1x16x16x128xbf16>
    %c0_7 = arith.constant 0 : index
    %c0_8 = arith.constant 0 : index
    %c0_9 = arith.constant 0 : index
    %c0_10 = arith.constant 0 : index
    %28 = vector.load %arg5[%c0_7, %c0_8, %c0_9, %c0_10] : memref<1x16x16x128xbf16, #tpu.memory_space<vmem>>, vector<1x16x16x128xbf16>
    tpu.vector_store %arg5[%c0_7, %c0_8, %c0_9, %c0_10], %27 {strides = array<i32>} : memref<1x16x16x128xbf16, #tpu.memory_space<vmem>>, vector<1x16x16x128xbf16>,
    return
  }
  func.func @transform_0(%arg0: i32, %arg1: i32) -> (i32, i32, i32, i32) {
    %c0_i32 = arith.constant 0 : i32
    %c0_i32_0 = arith.constant 0 : i32
    %c0_i32_1 = arith.constant 0 : i32
    %c0_i32_2 = arith.constant 0 : i32
    return %arg0, %c0_i32, %c0_i32_0, %c0_i32_1 : i32, i32, i32, i32
  }
  func.func @transform_1(%arg0: i32, %arg1: i32) -> (i32, i32) {
    %c0_i32 = arith.constant 0 : i32
    %c0_i32_0 = arith.constant 0 : i32
    %c0_i32_1 = arith.constant 0 : i32
    return %c0_i32, %c0_i32_0 : i32, i32
  }
  func.func @transform_2(%arg0: i32, %arg1: i32) -> (i32, i32) {
    %c0_i32 = arith.constant 0 : i32
    %c0_i32_0 = arith.constant 0 : i32
    %c0_i32_1 = arith.constant 0 : i32
    return %c0_i32, %c0_i32_0 : i32, i32
  }
  func.func @transform_3(%arg0: i32, %arg1: i32) -> (i32, i32, i32, i32) {
    %c0_i32 = arith.constant 0 : i32
    %c0_i32_0 = arith.constant 0 : i32
    %c0_i32_1 = arith.constant 0 : i32
    return %arg0, %arg1, %c0_i32, %c0_i32_0 : i32, i32, i32, i32
  }
}

</mosaic_0001>

<bundles_post_ra>
// kernel: tpu_custom_call.1
= control target key start
LH: loop header
LB: loop body
LE: loop exit
PB: predicated region body
PF: predicated region fallthrough
CT: control target
= control target key end

     0   :  { %8 = vsyncpa [#allocation3], 0  ;;  %s3035_s0 = inlined_call_operand.vmem [shape: bf16[2,18,18,4], index: 0, kind: input, shape index: {}]   ;;  %s3036_s1 = inlined_call_operand.vmem [shape: bf16[36,128], index: 1, kind: input, shape index: {}]   ;;  %s3037_s2 = inlined_call_operand.vmem [shape: f32[1,128], index: 2, kind: input, shape index: {}]   ;;  %s3038_s3 = inlined_call_operand.hbm [shape: bf16[2,16,16,128], index: 3, kind: output, shape index: {}]  }
   0x1   :  { %10 = vsyncpa [#allocation3 + $0x1], 0  ;;  %s2196_s12 = smov 0   ;;  %s2198_s13 = smov 0  }
   0x2   :  { %s2200_s14 = smov 0   ;;  %s2202_s15 = smov 0  }
   0x3   :  { %s2204_s16 = smov 0   ;;  %s2206_s17 = smov 0  }
   0x4 LB: > { %s1688_s18 = sadd.s32 4294967295, %s2164_s17   ;;  %s1689_s19 = sadd.s32 4294967294, %s2164_s17   ;;  %s2164_s17 = sphi %s2206_s17, %s16_s17   ;;  %s2160_s16 = sphi %s2204_s16, %s3045_s16   ;;  %s2156_s15 = sphi %s2202_s15, %s3044_s15   ;;  %s2152_s14 = sphi %s2200_s14, %s3043_s14   ;;  %s2148_s13 = sphi %s2198_s13, %s3042_s13   ;;  %s2144_s12 = sphi %s2196_s12, %s3041_s12  }
   0x5   : > { %s28_s20 = sadd.s32 1, %s2160_s16  ;;  %s105_s21 = sadd.s32 1, %s2152_s14 }
   0x6   : > { %p30_p0 = scmp.ge.s32.totalorder %s28_s20, 2  ;;  %p115_p1 = scmp.ne.s32.totalorder %s2152_s14, %s2148_s13 }
   0x7   : > { %p116_p2 = scmp.eq.s32.totalorder %s1688_s18, 1  ;;  %p121_p3 = scmp.ne.s32.totalorder %s2148_s13, %s2144_s12 }
   0x8   : > { %s3047_s20 = smov (%p30_p0, %s28_s20), 0  ;;  %p122_p5 = scmp.eq.s32.totalorder %s1689_s19, 1 }
   0x9   : > { %p2236_p4 = por %p116_p2, %p115_p1  ;;  %s100_s23 = ssub.s32 %s2160_s16, %s3047_s20 }
   0xa   : > { %p1692_p6 = scmp.ge.s32.totalorder %s2164_s17, 1  ;;  %p103_p7 = scmp.eq.s32.totalorder %s100_s23, 0 }
   0xb   : > { %p2243_p8 = por %p122_p5, %p121_p3  ;;  %p154_p9 = scmp.lt.s32.totalorder %s2164_s17, 3 }
   0xc   : > { %s2249_s25 = scalar_select %p103_p7, %s2152_s14, %s105_s21  }
   0xd   : > { %p155_p10 = pnand %p1692_p6, %p154_p9 }
   0xe   : > { %p178_p11 = scmp.lt.s32.totalorder (!%p155_p10), %s2156_s15, 1  ;;  %vm596_vm0 = vcmask (!%p155_p10), 1046528   ;;  %s2166_s4 = smov (!%p155_p10), 12   ;;  %vm371_vm1 = vsmask.f32 (!%p155_p10), 7424  ;;  %vm1239_vm2 = vcmask (!%p155_p10), 1041408  }
   0xf   : > { %158 = sbr.rel (%p155_p10) target bundleno = 633 (0x279), region = 32  ;;  %s2167_s5 = smov (!%p155_p10), 8   ;;  %vm915_vm3 = vcmask (!%p155_p10), 31744   ;;  %vm948_vm4 = vcmask (!%p155_p10), 64512   ;;  %vm1014_vm5 = vcmask (!%p155_p10), 130048   ;;  %vm981_vm6 = vcmask (!%p155_p10), 97280  }
  0x10   : > { %s2168_s6 = smov (!%p155_p10), 4   ;;  %s2169_s7 = smov (!%p155_p10), 16   ;;  %vm1047_vm7 = vcmask (!%p155_p10), 162816   ;;  %vm1080_vm8 = vcmask (!%p155_p10), 195584   ;;  %vm1113_vm9 = vcmask (!%p155_p10), 228352   ;;  %vm1146_vm10 = vcmask (!%p155_p10), 261120  }
  0x11   : > { %s2170_s8 = smov (!%p155_p10), 20   ;;  %s2171_s9 = smov (!%p155_p10), 24   ;;  %vm1206_vm11 = vcmask (!%p155_p10), 293888  }
  0x12   : > { %s2172_s21 = smov (!%p155_p10), 28   ;;  %s2174_s19 = smov (!%p155_p10), [#allocation2]  }
  0x16   : > { %s179_s26 = scalar_select %p178_p11, %s2156_s15, 1 }
  0x18   : > { %s1981_s27 = smul.u32 216, %s179_s26 }
  0x1a   : > { %s2256_s30 = scalar_lea.vmem %s3035_s0, %s1981_s27  ;;  %s2173_s27 = smov 32  }
  0x1b   : > { %v2259_v0 = vld [vmem:[%s2256_s30 + $0x6c] sm:$0xff]   ;;  %v2269_v2 = vld [vmem:[%s2256_s30 + $0x60] sm:$0xff]   ;;  %v2049_v3 = vld [vmem:[%s2256_s30 + $0x68] ss:$0 sps:$4 sm:$0x11]  }
  0x1c   : > { %v2262_v1 = vld [vmem:[%s2256_s30 + $0xc] sm:$0xff]   ;;  %698 = vrot.lane.b32.xlu1 %v2259_v0, %s2166_s4  ;;  %v2273_v4 = vld [vmem:[%s2256_s30] sm:$0xff]   ;;  %v624_v5 = vrot.slane %v2259_v0, 1  ;;  %v621_v6 = vrot.slane %v2269_v2, 1  ;;  %v622_v7 = vrot.slane %v2049_v3, 1  ;;  %v481_v26 = vshrl.u32 %v2259_v0, 16 }
  0x1d   : > { %682 = vrot.lane.b32.xlu0 %v2262_v1, %s2166_s4  ;;  %v2051_v8 = vld [vmem:[%s2256_s30 + $0x8] ss:$0 sps:$4 sm:$0x11]   ;;  %v600_v9 = vrot.slane %v2262_v1, 1  ;;  %v597_v10 = vrot.slane %v2273_v4, 1  ;;  %v385_v16 = vshrl.u32 %v2262_v1, 16 }
  0x1e   : > { %v2052_v11 = vld [vmem:[%s2256_s30 + $0x74] ss:$0 sps:$4 sm:$0x11]   ;;  %v2282_v12 = vsel %vm596_vm0, %v621_v6, %v622_v7  ;;  %v598_v13 = vrot.slane %v2051_v8, 1  ;;  %v387_v17 = vshll.u32 %v2262_v1, 16  ;;  %v373_v18 = vshrl.u32 %v2273_v4, 16 }
  0x1f   : > { %v2053_v14 = vld [vmem:[%s2256_s30 + $0x14] ss:$0 sps:$4 sm:$0x11]   ;;  %v625_v15 = vrot.slane %v2052_v11, 1  ;;  %v375_v22 = vshll.u32 %v2273_v4, 16  ;;  %v380_v25 = vshll.u32 %v2051_v8, 16 }
  0x20   : > { %661 = vrot.lane.b32.xlu1 %v2282_v12, %s2167_s5  ;;  %v599_v19 = vsel %vm596_vm0, %v597_v10, %v598_v13  ;;  %v601_v20 = vrot.slane %v2053_v14, 1  ;;  %v392_v21 = vshll.u32 %v2053_v14, 16  ;;  %v389_v24 = vrot.slane %v387_v17, 1  ;;  %v2304_v39 = vld [vmem:[%s2256_s30 + $0x78] sm:$0xff]   ;;  %v2352_v10 = vld [vmem:[%s2256_s30 + $0x84] sm:$0xff]  }
  0x21   : > { %645 = vrot.lane.b32.xlu0 %v599_v19, %s2167_s5  ;;  %v2294_v23 = vsel %vm596_vm0, %v624_v5, %v625_v15  ;;  %v377_v29 = vrot.slane %v375_v22, 1  ;;  %v483_v30 = vshll.u32 %v2259_v0, 16  ;;  %v382_v32 = vrot.slane %v380_v25, 1  ;;  %v2310_v46 = vld [vmem:[%s2256_s30 + $0x18] sm:$0xff]   ;;  %v2362_v14 = vld [vmem:[%s2256_s30 + $0x24] sm:$0xff]  }
  0x22   : > { %v602_v27 = vsel %vm596_vm0, %v600_v9, %v601_v20  ;;  %v394_v28 = vrot.slane %v392_v21, 1  ;;  %v390_v31 = vor.u32 %v389_v24, %v385_v16  ;;  %v488_v33 = vshll.u32 %v2052_v11, 16  ;;  %v2056_v47 = vld [vmem:[%s2256_s30 + $0x80] ss:$0 sps:$4 sm:$0x11]  }
  0x23   : > { %v469_v34 = vshrl.u32 %v2269_v2, 16  ;;  %v378_v35 = vor.u32 %v377_v29, %v373_v18  ;;  %v485_v36 = vrot.slane %v483_v30, 1  ;;  %v471_v37 = vshll.u32 %v2269_v2, 16  ;;  %v2057_v52 = vld [vmem:[%s2256_s30 + $0x20] ss:$0 sps:$4 sm:$0x11]  }
  0x24   : > { %663 = vrot.lane.b32.xlu1 %v2294_v23, %s2167_s5  ;;  %v476_v38 = vshll.u32 %v2049_v3, 16  ;;  %v395_v40 = vsel %vm371_vm1, %v390_v31, %v394_v28  ;;  %v490_v41 = vrot.slane %v488_v33, 1  ;;  %v495_v50 = vshll.u32 %v2304_v39, 16  ;;  %v2060_v15 = vld [vmem:[%s2256_s30 + $0x8c] ss:$0 sps:$4 sm:$0x11]  }
  0x25   : > { %647 = vrot.lane.b32.xlu0 %v602_v27, %s2167_s5  ;;  %v383_v42 = vsel %vm371_vm1, %v378_v35, %v382_v32  ;;  %v486_v43 = vor.u32 %v485_v36, %v481_v26  ;;  %v473_v44 = vrot.slane %v471_v37, 1  ;;  %v399_v53 = vshll.u32 %v2310_v46, 16  ;;  %v2061_v18 = vld [vmem:[%s2256_s30 + $0x2c] ss:$0 sps:$4 sm:$0x11]   ;;  %v2074_v22 = vld [vmem:[%s3036_s1] sm:$0xff]  }
  0x26   : > { %v478_v45 = vrot.slane %v476_v38, 1  ;;  %v493_v54 = vshrl.u32 %v2304_v39, 16  ;;  %v497_v55 = vrot.slane %v495_v50, 1  ;;  %v500_v56 = vshll.u32 %v2056_v47, 16  ;;  %1935 = vmatprep.subr.bf16.mxu0 %v2074_v22  ;;  %1973 = vmatprep.subr.bf16.mxu1 %v2074_v22 }
  0x27   : > { %v2315_v48 = vsel %vm371_vm1, %v486_v43, %v490_v41  ;;  %v474_v49 = vor.u32 %v473_v44, %v469_v34  ;;  %v397_v57 = vshrl.u32 %v2310_v46, 16  ;;  %v401_v58 = vrot.slane %v399_v53, 1  ;;  %1936 = vmatpush3.bf16.msra.mxu0 %v2074_v22  ;;  %1976 = vmatpush3.bf16.msra.mxu1 %v2074_v22  ;;  %v2078_v32 = vld [vmem:[%s3036_s1 + $0x10] ss:$0 sps:$4 sm:$0x33]  }
  0x28   : > { %566 = vrot.lane.b32.xlu1 %v395_v40, %s2168_s6  ;;  %v404_v59 = vshll.u32 %v2057_v52, 16  ;;  %v498_v60 = vor.u32 %v497_v55, %v493_v54  ;;  %v502_v61 = vrot.slane %v500_v56, 1  ;;  %v627_v6 = vrot.slane %v2304_v39, 1  ;;  %v2418_v43 = vld [vmem:[%s2256_s30 + $0x90] sm:$0xff]  }
  0x29   : > { %564 = vrot.lane.b32.xlu0 %v383_v42, %s2168_s6  ;;  %v2320_v51 = vsel %vm371_vm1, %v474_v49, %v478_v45  ;;  %v402_v62 = vor.u32 %v401_v58, %v397_v57  ;;  %v628_v7 = vrot.slane %v2056_v47, 1  ;;  %v603_v8 = vrot.slane %v2310_v46, 1  ;;  %v2423_v44 = vld [vmem:[%s2256_s30 + $0x30] sm:$0xff]   ;;  %v2064_v45 = vld [vmem:[%s2256_s30 + $0x98] ss:$0 sps:$4 sm:$0x11]  }
  0x2a   : > { %v406_v63 = vrot.slane %v404_v59, 1  ;;  %v2337_v3 = vsel %vm371_vm1, %v498_v60, %v502_v61  ;;  %v604_v9 = vrot.slane %v2057_v52, 1  ;;  %v507_v16 = vshll.u32 %v2352_v10, 16  ;;  %v2065_v49 = vld [vmem:[%s2256_s30 + $0x38] ss:$0 sps:$4 sm:$0x11]  }
  0x2b   : > { %v2355_v11 = vsel %vm596_vm0, %v627_v6, %v628_v7  ;;  %v505_v17 = vshrl.u32 %v2352_v10, 16  ;;  %v512_v19 = vshll.u32 %v2060_v15, 16  ;;  %v411_v20 = vshll.u32 %v2362_v14, 16 }
  0x2c   : > { %582 = vrot.lane.b32.xlu1 %v2315_v48, %s2168_s6  ;;  %v2341_v5 = vsel %vm371_vm1, %v402_v62, %v406_v63  ;;  %v2359_v13 = vsel %vm596_vm0, %v603_v8, %v604_v9  ;;  %v509_v21 = vrot.slane %v507_v16, 1  ;;  %v409_v24 = vshrl.u32 %v2362_v14, 16  ;;  %v2452_v9 = vld [vmem:[%s2256_s30 + $0x9c] sm:$0xff]  }
  0x2d   : > { %580 = vrot.lane.b32.xlu0 %v2320_v51, %s2168_s6  ;;  %v413_v25 = vrot.slane %v411_v20, 1  ;;  %v416_v26 = vshll.u32 %v2061_v18, 16  ;;  %v514_v29 = vrot.slane %v512_v19, 1  ;;  %v1241_v34 = vsel %vm1239_vm2, %v2078_v32, 0 }
  0x2e   : > { %v510_v28 = vor.u32 %v509_v21, %v505_v17  ;;  %v630_v36 = vrot.slane %v2352_v10, 1  ;;  %v631_v37 = vrot.slane %v2060_v15, 1  ;;  %v606_v38 = vrot.slane %v2362_v14, 1  ;;  %v2068_v15 = vld [vmem:[%s2256_s30 + $0xa4] ss:$0 sps:$4 sm:$0x11]  }
  0x2f   : > { %v414_v30 = vor.u32 %v413_v25, %v409_v24  ;;  %v418_v31 = vrot.slane %v416_v26, 1  ;;  %v519_v47 = vshll.u32 %v2418_v43, 16  ;;  %v423_v50 = vshll.u32 %v2423_v44, 16  ;;  %v2069_v17 = vld [vmem:[%s2256_s30 + $0x44] ss:$0 sps:$4 sm:$0x11]  }
  0x30   : > { %700 = vrot.lane.b32.xlu1 %v2304_v39, %s2166_s4  ;;  %v515_v33 = vsel %vm371_vm1, %v510_v28, %v514_v29  ;;  %v632_v41 = vsel %vm596_vm0, %v630_v36, %v631_v37  ;;  %v517_v52 = vshrl.u32 %v2418_v43, 16  ;;  %v524_v54 = vshll.u32 %v2064_v45, 16 }
  0x31   : > { %684 = vrot.lane.b32.xlu0 %v2310_v46, %s2166_s4  ;;  %v419_v35 = vsel %vm371_vm1, %v414_v30, %v418_v31  ;;  %v521_v53 = vrot.slane %v519_v47, 1  ;;  %v421_v55 = vshrl.u32 %v2423_v44, 16  ;;  %v425_v56 = vrot.slane %v423_v50, 1 }
  0x32   : > { %v428_v57 = vshll.u32 %v2065_v49, 16  ;;  %v526_v59 = vrot.slane %v524_v54, 1  ;;  %v609_v6 = vrot.slane %v2423_v44, 1  ;;  %v610_v7 = vrot.slane %v2065_v49, 1 }
  0x33   : > { %v522_v58 = vor.u32 %v521_v53, %v517_v52  ;;  %v426_v60 = vor.u32 %v425_v56, %v421_v55  ;;  %v531_v16 = vshll.u32 %v2452_v9, 16  ;;  %v529_v19 = vshrl.u32 %v2452_v9, 16  ;;  %v2518_v56 = vld [vmem:[%s2256_s30 + $0xa8] sm:$0xff]  }
  0x34   : > { %745 = vrot.lane.b32.xlu1 %v2315_v48, %s2169_s7  ;;  %v430_v61 = vrot.slane %v428_v57, 1  ;;  %v536_v21 = vshll.u32 %v2068_v15, 16  ;;  %v440_v25 = vshll.u32 %v2069_v17, 16  ;;  %v636_v36 = vrot.slane %v2452_v9, 1 }
  0x35   : > { %729 = vrot.lane.b32.xlu0 %v395_v40, %s2169_s7  ;;  %v607_v40 = vrot.slane %v2061_v18, 1  ;;  %v527_v62 = vsel %vm371_vm1, %v522_v58, %v526_v59  ;;  %v533_v20 = vrot.slane %v531_v16, 1  ;;  %v637_v37 = vrot.slane %v2068_v15, 1  ;;  %v2524_v58 = vld [vmem:[%s2256_s30 + $0x48] sm:$0xff]  }
  0x36   : > { %v431_v63 = vsel %vm371_vm1, %v426_v60, %v430_v61  ;;  %v442_v29 = vrot.slane %v440_v25, 1  ;;  %v2072_v60 = vld [vmem:[%s2256_s30 + $0xb0] ss:$0 sps:$4 sm:$0x11]   ;;  %v543_v61 = vshll.u32 %v2518_v56, 16  ;;  %v445_v15 = vshrl.u32 %v2524_v58, 16 }
  0x37   : > { %v608_v42 = vsel %vm596_vm0, %v606_v38, %v607_v40  ;;  %v534_v26 = vor.u32 %v533_v20, %v529_v19 }
  0x38   : > { %747 = vrot.lane.b32.xlu1 %v2337_v3, %s2169_s7 }
  0x39   : > { %731 = vrot.lane.b32.xlu0 %v2341_v5, %s2169_s7 }
  0x3c   : > { %780 = vrot.lane.b32.xlu1 %v2294_v23, %s2170_s8 }
  0x3d   : > { %764 = vrot.lane.b32.xlu0 %v602_v27, %s2170_s8  ;;  %v2075_v27 = vld [vmem:[%s3036_s1 + $0x8] sm:$0xff]  }
  0x3e   : > { %1937 = vmatprep.subr.bf16.mxu0 %v2075_v27  ;;  %1974 = vmatprep.subr.bf16.mxu1 %v2075_v27 }
  0x3f   : > { %1938 = vmatpush3.bf16.msra.mxu0 %v2075_v27  ;;  %1977 = vmatpush3.bf16.msra.mxu1 %v2075_v27  ;;  %v538_v27 = vrot.slane %v536_v21, 1 }
  0x40   : > { %782 = vrot.lane.b32.xlu1 %v2355_v11, %s2170_s8  ;;  %1979 = vmatprep.subr.msk.bf16.mxu0 %vm1239_vm2, %v2078_v32 }
  0x41   : > { %766 = vrot.lane.b32.xlu0 %v2359_v13, %s2170_s8  ;;  %1980 = vmatprep.subr.msk.bf16.mxu1 %vm1239_vm2, %v2078_v32  ;;  %v539_v31 = vsel %vm371_vm1, %v534_v26, %v538_v27 }
  0x43   : > { %1940 = vmatpush3.bf16.msra.mxu0 %v1241_v34  ;;  %1978 = vmatpush3.bf16.msra.mxu1 %v1241_v34 }
  0x44   : > { %817 = vrot.lane.b32.xlu1 %v2304_v39, %s2171_s9 }
  0x45   : > { %801 = vrot.lane.b32.xlu0 %v2310_v46, %s2171_s9 }
  0x48   : > { %819 = vrot.lane.b32.xlu1 %v2352_v10, %s2171_s9 }
  0x49   : > { %803 = vrot.lane.b32.xlu0 %v2362_v14, %s2171_s9 }
  0x4c   : > { %864 = vrot.lane.b32.xlu1 %v2337_v3, %s2172_s21 }
  0x4d   : > { %848 = vrot.lane.b32.xlu0 %v2341_v5, %s2172_s21 }
  0x50   : > { %866 = vrot.lane.b32.xlu1 %v515_v33, %s2172_s21 }
  0x51   : > { %850 = vrot.lane.b32.xlu0 %v419_v35, %s2172_s21 }
  0x54   : > { %899 = vrot.lane.b32.xlu1 %v2355_v11, %s2173_s27 }
  0x55   : > { %883 = vrot.lane.b32.xlu0 %v2359_v13, %s2173_s27 }
  0x58   : > { %584 = vrot.lane.b32.xlu1 %v2337_v3, %s2168_s6  ;;  %v633_v3 = vrot.slane %v2418_v43, 1 }
  0x59   : > { %568 = vrot.lane.b32.xlu0 %v2341_v5, %s2168_s6  ;;  %v634_v5 = vrot.slane %v2064_v45, 1  ;;  %v638_v45 = vsel %vm596_vm0, %v636_v36, %v637_v37  ;;  %v639_v36 = vrot.slane %v2518_v56, 1  ;;  %v640_v37 = vrot.slane %v2072_v60, 1 }
  0x5b   : > { %v635_v8 = vsel %vm596_vm0, %v633_v3, %v634_v5  ;;  %v447_v3 = vshll.u32 %v2524_v58, 16 }
  0x5c   : > { %901 = vrot.lane.b32.xlu1 %v632_v41, %s2173_s27 }
  0x5d   : > { %885 = vrot.lane.b32.xlu0 %v608_v42, %s2173_s27  ;;  %v449_v16 = vrot.slane %v447_v3, 1  ;;  %v2580_v3 = vld [vmem:[%s2256_s30 + $0xb4] sm:$0xff]  }
  0x60   : > { %586 = vrot.lane.b32.xlu1 %v515_v33, %s2168_s6 }
  0x61   : > { %570 = vrot.lane.b32.xlu0 %v419_v35, %s2168_s6 }
  0x64   : > { %665 = vrot.lane.b32.xlu1 %v2355_v11, %s2167_s5  ;;  %v611_v11 = vsel %vm596_vm0, %v609_v6, %v610_v7  ;;  %v541_v6 = vshrl.u32 %v2518_v56, 16  ;;  %v545_v7 = vrot.slane %v543_v61, 1 }
  0x65   : > { %649 = vrot.lane.b32.xlu0 %v2359_v13, %s2167_s5  ;;  %v2457_v13 = vld [vmem:[%s2256_s30 + $0x3c] sm:$0xff]  }
  0x66   : > { %v435_v18 = vshll.u32 %v2457_v13, 16  ;;  %v433_v22 = vshrl.u32 %v2457_v13, 16  ;;  %v612_v40 = vrot.slane %v2457_v13, 1  ;;  %v546_v19 = vor.u32 %v545_v7, %v541_v6 }
  0x68   : > { %667 = vrot.lane.b32.xlu1 %v632_v41, %s2167_s5  ;;  %v437_v24 = vrot.slane %v435_v18, 1 }
  0x69   : > { %651 = vrot.lane.b32.xlu0 %v608_v42, %s2167_s5 }
  0x6a   : > { %v438_v28 = vor.u32 %v437_v24, %v433_v22  ;;  %v450_v22 = vor.u32 %v449_v16, %v445_v15 }
  0x6c   : > { %702 = vrot.lane.b32.xlu1 %v2352_v10, %s2166_s4 }
  0x6d   : > { %686 = vrot.lane.b32.xlu0 %v2362_v14, %s2166_s4 }
  0x70   : > { %704 = vrot.lane.b32.xlu1 %v2418_v43, %s2166_s4 }
  0x71   : > { %688 = vrot.lane.b32.xlu0 %v2423_v44, %s2166_s4 }
  0x74   : > { %749 = vrot.lane.b32.xlu1 %v515_v33, %s2169_s7  ;;  %v443_v33 = vsel %vm371_vm1, %v438_v28, %v442_v29 }
  0x75   : > { %733 = vrot.lane.b32.xlu0 %v419_v35, %s2169_s7 }
  0x78   : > { %751 = vrot.lane.b32.xlu1 %v527_v62, %s2169_s7 }
  0x79   : > { %735 = vrot.lane.b32.xlu0 %v431_v63, %s2169_s7 }
  0x7c   : > { %784 = vrot.lane.b32.xlu1 %v632_v41, %s2170_s8  ;;  %v613_v41 = vrot.slane %v2069_v17, 1 }
  0x7d   : > { %768 = vrot.lane.b32.xlu0 %v608_v42, %s2170_s8 }
  0x7e   : > { %v2503_v49 = vsel %vm596_vm0, %v612_v40, %v613_v41 }
  0x80   : > { %786 = vrot.lane.b32.xlu1 %v635_v8, %s2170_s8 }
  0x81   : > { %770 = vrot.lane.b32.xlu0 %v611_v11, %s2170_s8 }
  0x84   : > { %821 = vrot.lane.b32.xlu1 %v2418_v43, %s2171_s9 }
  0x85   : > { %805 = vrot.lane.b32.xlu0 %v2423_v44, %s2171_s9 }
  0x88   : > { %823 = vrot.lane.b32.xlu1 %v2452_v9, %s2171_s9 }
  0x89   : > { %807 = vrot.lane.b32.xlu0 %v2457_v13, %s2171_s9 }
  0x8c   : > { %868 = vrot.lane.b32.xlu1 %v527_v62, %s2172_s21 }
  0x8d   : > { %852 = vrot.lane.b32.xlu0 %v431_v63, %s2172_s21 }
  0x8e   : > { %v2476_v30 = vpop.permute.xlu1 %698 }
  0x8f   : > { %v2480_v32 = vpop.permute.xlu0 %682 }
  0x90   : > { %870 = vrot.lane.b32.xlu1 %v539_v31, %s2172_s21 }
  0x91   : > { %854 = vrot.lane.b32.xlu0 %v443_v33, %s2172_s21 }
  0x92   : > { %v2485_v34 = vpop.permute.xlu1 %661 }
  0x93   : > { %v2487_v35 = vpop.permute.xlu0 %645 }
  0x94   : > { %903 = vrot.lane.b32.xlu1 %v635_v8, %s2173_s27 }
  0x95   : > { %887 = vrot.lane.b32.xlu0 %v611_v11, %s2173_s27 }
  0x96   : > { %v2492_v38 = vpop.permute.xlu1 %663 }
  0x97   : > { %v2495_v42 = vpop.permute.xlu0 %647 }
  0x98   : > { %588 = vrot.lane.b32.xlu1 %v527_v62, %s2168_s6 }
  0x99   : > { %572 = vrot.lane.b32.xlu0 %v431_v63, %s2168_s6  ;;  %v2073_v63 = vld [vmem:[%s2256_s30 + $0x50] ss:$0 sps:$4 sm:$0x11]  }
  0x9a   : > { %v2500_v47 = vpop.permute.xlu1 %566  ;;  %v452_v17 = vshll.u32 %v2073_v63, 16  ;;  %v616_v40 = vrot.slane %v2073_v63, 1 }
  0x9b   : > { %v565_v50 = vpop.permute.xlu0 %564 }
  0x9c   : > { %905 = vrot.lane.b32.xlu1 %v638_v45, %s2173_s27  ;;  %v454_v24 = vrot.slane %v452_v17, 1  ;;  %v917_v6 = vsel %vm915_vm3, %v2273_v4, %v565_v50 }
  0x9d   : > { %889 = vrot.lane.b32.xlu0 %v2503_v49, %s2173_s27  ;;  %v950_v4 = vsel %vm948_vm4, %v917_v6, %v2487_v35  ;;  %v2609_v35 = vld [vmem:[%s2256_s30 + $0x5c] ss:$0 sps:$4 sm:$0x11]  }
  0x9e   : > { %v2508_v52 = vpop.permute.xlu1 %582  ;;  %v2561_v28 = vsel %vm371_vm1, %v450_v22, %v454_v24  ;;  %v553_v22 = vshrl.u32 %v2580_v3, 16 }
  0x9f   : > { %v581_v53 = vpop.permute.xlu0 %580 }
  0xa0   : > { %590 = vrot.lane.b32.xlu1 %v539_v31, %s2168_s6  ;;  %v933_v41 = vsel %vm915_vm3, %v2269_v2, %v581_v53 }
  0xa1   : > { %574 = vrot.lane.b32.xlu0 %v443_v33, %s2168_s6  ;;  %v966_v53 = vsel %vm948_vm4, %v933_v41, %v2485_v34  ;;  %v555_v34 = vshll.u32 %v2580_v3, 16 }
  0xa2   : > { %v2512_v54 = vpop.permute.xlu1 %700  ;;  %v999_v50 = vsel %vm981_vm6, %v966_v53, %v2476_v30  ;;  %v464_v53 = vshll.u32 %v2609_v35, 16 }
  0xa3   : > { %v2514_v55 = vpop.permute.xlu0 %684 }
  0xa4   : > { %669 = vrot.lane.b32.xlu1 %v635_v8, %s2167_s5  ;;  %v548_v8 = vshll.u32 %v2072_v60, 16  ;;  %v2577_v60 = vsel %vm596_vm0, %v639_v36, %v640_v37  ;;  %v557_v36 = vrot.slane %v555_v34, 1 }
  0xa5   : > { %653 = vrot.lane.b32.xlu0 %v611_v11, %s2167_s5 }
  0xa6   : > { %v2521_v57 = vpop.permute.xlu1 %745  ;;  %v550_v20 = vrot.slane %v548_v8, 1 }
  0xa7   : > { %v2526_v59 = vpop.permute.xlu0 %729  ;;  %v1032_v16 = vsel %vm1014_vm5, %v999_v50, %v2521_v57 }
  0xa8   : > { %671 = vrot.lane.b32.xlu1 %v638_v45, %s2167_s5  ;;  %v2557_v26 = vsel %vm371_vm1, %v546_v19, %v550_v20  ;;  %v983_v19 = vsel %vm981_vm6, %v950_v4, %v2480_v32  ;;  %v935_v32 = vsel %vm915_vm3, %v2259_v0, %v2508_v52  ;;  %v919_v0 = vsel %vm915_vm3, %v2262_v1, %v2500_v47 }
  0xa9   : > { %655 = vrot.lane.b32.xlu0 %v2503_v49, %s2167_s5  ;;  %v1016_v57 = vsel %vm1014_vm5, %v983_v19, %v2526_v59  ;;  %v558_v4 = vor.u32 %v557_v36, %v553_v22  ;;  %v952_v47 = vsel %vm948_vm4, %v919_v0, %v2495_v42 }
  0xaa   : > { %v2533_v62 = vpop.permute.xlu1 %747 }
  0xab   : > { %v2537_v5 = vpop.permute.xlu0 %731 }
  0xac   : > { %706 = vrot.lane.b32.xlu1 %v2452_v9, %s2166_s4 }
  0xad   : > { %690 = vrot.lane.b32.xlu0 %v2457_v13, %s2166_s4 }
  0xae   : > { %v781_v11 = vpop.permute.xlu1 %780 }
  0xaf   : > { %v2545_v18 = vpop.permute.xlu0 %764  ;;  %v1065_v20 = vsel %vm1047_vm7, %v1032_v16, %v781_v11  ;;  %v466_v16 = vrot.slane %v464_v53, 1  ;;  %v2081_v53 = vld [vmem:[%s2256_s30 + $0xc0] sm:$0xff]  }
  0xb0   : > { %708 = vrot.lane.b32.xlu1 %v2518_v56, %s2166_s4  ;;  %v1049_v11 = vsel %vm1047_vm7, %v1016_v57, %v2545_v18 }
  0xb1   : > { %692 = vrot.lane.b32.xlu0 %v2524_v58, %s2166_s4 }
  0xb2   : > { %v2551_v21 = vpop.permute.xlu1 %782 }
  0xb3   : > { %v2553_v25 = vpop.permute.xlu0 %766 }
  0xb4   : > { %753 = vrot.lane.b32.xlu1 %v539_v31, %s2169_s7 }
  0xb5   : > { %737 = vrot.lane.b32.xlu0 %v443_v33, %s2169_s7  ;;  %v615_v33 = vrot.slane %v2524_v58, 1 }
  0xb6   : > { %v818_v27 = vpop.permute.xlu1 %817 }
  0xb7   : > { %v802_v29 = vpop.permute.xlu0 %801  ;;  %v2589_v7 = vsel %vm596_vm0, %v615_v33, %v616_v40  ;;  %v1098_v24 = vsel %vm1080_vm8, %v1065_v20, %v818_v27 }
  0xb8   : > { %755 = vrot.lane.b32.xlu1 %v2557_v26, %s2169_s7  ;;  %v1082_v27 = vsel %vm1080_vm8, %v1049_v11, %v802_v29  ;;  %v968_v29 = vsel %vm948_vm4, %v935_v32, %v2492_v38 }
  0xb9   : > { %739 = vrot.lane.b32.xlu0 %v2561_v28, %s2169_s7  ;;  %v1001_v50 = vsel %vm981_vm6, %v968_v29, %v2512_v54  ;;  %v720_v29 = vshll.u32 %v2081_v53, 16 }
  0xba   : > { %v2568_v31 = vpop.permute.xlu1 %819  ;;  %v1034_v38 = vsel %vm1014_vm5, %v1001_v50, %v2533_v62 }
  0xbb   : > { %v2573_v61 = vpop.permute.xlu0 %803  ;;  %v1067_v54 = vsel %vm1047_vm7, %v1034_v38, %v2551_v21 }
  0xbc   : > { %788 = vrot.lane.b32.xlu1 %v638_v45, %s2170_s8  ;;  %v2592_v45 = vld [vmem:[%s2256_s30 + $0x54] sm:$0xff]   ;;  %v1100_v42 = vsel %vm1080_vm8, %v1067_v54, %v2568_v31 }
  0xbd   : > { %772 = vrot.lane.b32.xlu0 %v2503_v49, %s2170_s8  ;;  %v2599_v49 = vld [vmem:[%s2256_s30 + $0xbc] ss:$0 sps:$4 sm:$0x11]   ;;  %v459_v17 = vshll.u32 %v2592_v45, 16  ;;  %v457_v59 = vshrl.u32 %v2592_v45, 16  ;;  %v618_v11 = vrot.slane %v2592_v45, 1 }
  0xbe   : > { %v865_v63 = vpop.permute.xlu1 %864  ;;  %v560_v37 = vshll.u32 %v2599_v49, 16 }
  0xbf   : > { %v849_v8 = vpop.permute.xlu0 %848  ;;  %v1131_v33 = vsel %vm1113_vm9, %v1098_v24, %v865_v63  ;;  %v461_v6 = vrot.slane %v459_v17, 1  ;;  %v985_v17 = vsel %vm981_vm6, %v952_v47, %v2514_v55 }
  0xc0   : > { %790 = vrot.lane.b32.xlu1 %v2577_v60, %s2170_s8  ;;  %v1115_v52 = vsel %vm1113_vm9, %v1082_v27, %v849_v8  ;;  %v562_v34 = vrot.slane %v560_v37, 1  ;;  %v1018_v20 = vsel %vm1014_vm5, %v985_v17, %v2537_v5  ;;  %v643_v37 = vrot.slane %v2599_v49, 1 }
  0xc1   : > { %774 = vrot.lane.b32.xlu0 %v2589_v7, %s2170_s8  ;;  %v462_v8 = vor.u32 %v461_v6, %v457_v59  ;;  %v1051_v22 = vsel %vm1047_vm7, %v1018_v20, %v2553_v25 }
  0xc2   : > { %v867_v15 = vpop.permute.xlu1 %866  ;;  %v563_v62 = vsel %vm371_vm1, %v558_v4, %v562_v34  ;;  %v1084_v57 = vsel %vm1080_vm8, %v1051_v22, %v2573_v61  ;;  %v722_v34 = vrot.slane %v720_v29, 1  ;;  %v761_v22 = vrot.slane %v2081_v53, 1 }
  0xc3   : > { %v851_v30 = vpop.permute.xlu0 %850  ;;  %v1133_v55 = vsel %vm1113_vm9, %v1100_v42, %v867_v15  ;;  %v467_v5 = vsel %vm371_vm1, %v462_v8, %v466_v16 }
  0xc4   : > { %825 = vrot.lane.b32.xlu1 %v2518_v56, %s2171_s9  ;;  %v1117_v31 = vsel %vm1113_vm9, %v1084_v57, %v851_v30  ;;  %v642_v30 = vrot.slane %v2580_v3, 1 }
  0xc5   : > { %809 = vrot.lane.b32.xlu0 %v2524_v58, %s2171_s9 }
  0xc6   : > { %v900_v40 = vpop.permute.xlu1 %899  ;;  %v644_v59 = vsel %vm596_vm0, %v642_v30, %v643_v37  ;;  %v2759_v30 = vld [vmem:[%s2256_s30 + $0xd4] ss:$0 sps:$4 sm:$0x11]  }
  0xc7   : > { %v1164_v41 = vsel %vm1146_vm10, %v1131_v33, %v900_v40  ;;  %v884_v18 = vpop.permute.xlu0 %883  ;;  %v619_v33 = vrot.slane %v2609_v35, 1 }
  0xc8   : > { %827 = vrot.lane.b32.xlu1 %v2580_v3, %s2171_s9  ;;  %1957 = vmatprep.mubr.msk.bf16.mxu1 %vm1206_vm11, %v1164_v41  ;;  %v1148_v63 = vsel %vm1146_vm10, %v1115_v52, %v884_v18  ;;  %v2082_v18 = vld [vmem:[%s2256_s30 + $0xc8] ss:$0 sps:$4 sm:$0x11]  }
  0xc9   : > { %811 = vrot.lane.b32.xlu0 %v2592_v45, %s2171_s9  ;;  %1941 = vmatprep.mubr.msk.bf16.mxu0 %vm1206_vm11, %v1148_v63  ;;  %v620_v27 = vsel %vm596_vm0, %v618_v11, %v619_v33  ;;  %v725_v50 = vshll.u32 %v2082_v18, 16 }
  0xca   : > { %v2649_v1 = vpop.permute.xlu1 %584 }
  0xcb   : > { %v2659_v19 = vpop.permute.xlu0 %568  ;;  %v727_v8 = vrot.slane %v725_v50, 1 }
  0xcc   : > { %872 = vrot.lane.b32.xlu1 %v2557_v26, %s2172_s21  ;;  %v921_v11 = vsel %vm915_vm3, %v2310_v46, %v2659_v19 }
  0xcd   : > { %856 = vrot.lane.b32.xlu0 %v2561_v28, %s2172_s21 }
  0xce   : > { %v902_v21 = vpop.permute.xlu1 %901 }
  0xcf   : > { %v1166_v24 = vsel %vm1146_vm10, %v1133_v55, %v902_v21  ;;  %v886_v36 = vpop.permute.xlu0 %885  ;;  %v762_v55 = vrot.slane %v2082_v18, 1 }
  0xd0   : > { %874 = vrot.lane.b32.xlu1 %v563_v62, %s2172_s21  ;;  %1958 = vmatmul.mubr.msk.bf16.vlgmr.msra.gmra.mrb[0].mxu1 %vm1206_vm11, %v1166_v24  ;;  %v1150_v25 = vsel %vm1146_vm10, %v1117_v31, %v886_v36  ;;  %v2749_v24 = vld [vmem:[%s2256_s30 + $0xcc] sm:$0xff]   ;;  %v937_v31 = vsel %vm915_vm3, %v2304_v39, %v2649_v1 }
  0xd1   : > { %858 = vrot.lane.b32.xlu0 %v467_v5, %s2172_s21  ;;  %1942 = vmatmul.mubr.msk.bf16.vlgmr.msra.gmra.mrb[0].mxu0 %vm1206_vm11, %v1150_v25  ;;  %v839_v37 = vshll.u32 %v2749_v24, 16  ;;  %v837_v46 = vshrl.u32 %v2749_v24, 16 }
  0xd2   : > { %v2683_v15 = vpop.permute.xlu1 %586 }
  0xd3   : > { %v2685_v61 = vpop.permute.xlu0 %570  ;;  %v841_v29 = vrot.slane %v839_v37, 1 }
  0xd4   : > { %907 = vrot.lane.b32.xlu1 %v2577_v60, %s2173_s27 }
  0xd5   : > { %891 = vrot.lane.b32.xlu0 %v2589_v7, %s2173_s27 }
  0xd6   : > { %v666_v32 = vpop.permute.xlu1 %665 }
  0xd7   : > { %v2695_v40 = vpop.permute.xlu0 %649  ;;  %v970_v25 = vsel %vm948_vm4, %v937_v31, %v666_v32 }
  0xd8   : > { %592 = vrot.lane.b32.xlu1 %v2557_v26, %s2168_s6  ;;  %v954_v1 = vsel %vm948_vm4, %v921_v11, %v2695_v40 }
  0xd9   : > { %576 = vrot.lane.b32.xlu0 %v2561_v28, %s2168_s6 }
  0xda   : > { %v2702_v49 = vpop.permute.xlu1 %667 }
  0xdb   : > { %v2705_v41 = vpop.permute.xlu0 %651 }
  0xdc   : > { %909 = vrot.lane.b32.xlu1 %v644_v59, %s2173_s27 }
  0xdd   : > { %893 = vrot.lane.b32.xlu0 %v620_v27, %s2173_s27 }
  0xde   : > { %v703_v35 = vpop.permute.xlu1 %702 }
  0xdf   : > { %v687_v6 = vpop.permute.xlu0 %686  ;;  %v1003_v33 = vsel %vm981_vm6, %v970_v25, %v703_v35  ;;  %v881_v25 = vrot.slane %v2759_v30, 1 }
  0xe0   : > { %594 = vrot.lane.b32.xlu1 %v563_v62, %s2168_s6  ;;  %v987_v32 = vsel %vm981_vm6, %v954_v1, %v687_v6 }
  0xe1   : > { %578 = vrot.lane.b32.xlu0 %v467_v5, %s2168_s6 }
  0xe2   : > { %v2711_v26 = vpop.permute.xlu1 %704 }
  0xe3   : > { %v2713_v28 = vpop.permute.xlu0 %688 }
  0xe4   : > { %673 = vrot.lane.b32.xlu1 %v2577_v60, %s2167_s5  ;;  %v718_v60 = vshrl.u32 %v2081_v53, 16 }
  0xe5   : > { %657 = vrot.lane.b32.xlu0 %v2589_v7, %s2167_s5 }
  0xe6   : > { %v750_v0 = vpop.permute.xlu1 %749  ;;  %v723_v38 = vor.u32 %v722_v34, %v718_v60  ;;  %v844_v60 = vshll.u32 %v2759_v30, 16 }
  0xe7   : > { %v734_v52 = vpop.permute.xlu0 %733 }
  0xe8   : > { %675 = vrot.lane.b32.xlu1 %v644_v59, %s2167_s5  ;;  %v728_v54 = vsel %vm371_vm1, %v723_v38, %v727_v8  ;;  %v1020_v19 = vsel %vm1014_vm5, %v987_v32, %v734_v52  ;;  %v939_v52 = vsel %vm915_vm3, %v2352_v10, %v2683_v15  ;;  %v842_v38 = vor.u32 %v841_v29, %v837_v46  ;;  %v2085_v15 = vld [vmem:[%s2256_s30 + $0x6c] sm:$0xff]   ;;  %s175_s30 = sand.u32 1, %s2148_s13  }
  0xe9   : > { %659 = vrot.lane.b32.xlu0 %v620_v27, %s2167_s5  ;;  %v846_v8 = vrot.slane %v844_v60, 1 }
  0xea   : > { %v2723_v63 = vpop.permute.xlu1 %751 }
  0xeb   : > { %v2725_v4 = vpop.permute.xlu0 %735  ;;  %v847_v31 = vsel %vm371_vm1, %v842_v38, %v846_v8 }
  0xec   : > { %710 = vrot.lane.b32.xlu1 %v2580_v3, %s2166_s4 }
  0xed   : > { %694 = vrot.lane.b32.xlu0 %v2592_v45, %s2166_s4 }
  0xee   : > { %v785_v7 = vpop.permute.xlu1 %784 }
  0xef   : > { %v769_v47 = vpop.permute.xlu0 %768 }
  0xf0   : > { %712 = vrot.lane.b32.xlu1 %v2081_v53, %s2166_s4  ;;  %v1053_v40 = vsel %vm1047_vm7, %v1020_v19, %v769_v47 }
  0xf1   : > { %696 = vrot.lane.b32.xlu0 %v2269_v2, %s2166_s4  ;;  %s1693_s4 = sshll.u32 %s175_s30, 7 }
  0xf2   : > { %v2734_v16 = vpop.permute.xlu1 %786  ;;  %s2935_s5 = scalar_lea.vmem [#allocation2], %s1693_s4 }
  0xf3   : > { %v2736_v17 = vpop.permute.xlu0 %770 }
  0xf4   : > { %757 = vrot.lane.b32.xlu1 %v563_v62, %s2169_s7  ;;  %v2746_v62 = vsel %vm596_vm0, %v761_v22, %v762_v55 }
  0xf5   : > { %741 = vrot.lane.b32.xlu0 %v467_v5, %s2169_s7 }
  0xf6   : > { %v822_v20 = vpop.permute.xlu1 %821 }
  0xf7   : > { %v806_v42 = vpop.permute.xlu0 %805 }
  0xf8   : > { %759 = vrot.lane.b32.xlu1 %v728_v54, %s2169_s7 }
  0xf9   : > { %743 = vrot.lane.b32.xlu0 %v2320_v51, %s2169_s7  ;;  %s1820_s7 = sshll.u32 %s2156_s15, 11  ;;  %s2988_s15 = scalar_lea.sflag [#allocation3], %s175_s30 }
  0xfa   : > { %v824_v21 = vpop.permute.xlu1 %823  ;;  %s2979_s11 = scalar_lea.hbm %s3038_s3, %s1820_s7 }
  0xfb   : > { %v808_v57 = vpop.permute.xlu0 %807 }
  0xfc   : > { %792 = vrot.lane.b32.xlu1 %v644_v59, %s2170_s8  ;;  %v1036_v59 = vsel %vm1014_vm5, %v1003_v33, %v750_v0 }
  0xfd   : > { %776 = vrot.lane.b32.xlu0 %v620_v27, %s2170_s8  ;;  %v1069_v27 = vsel %vm1047_vm7, %v1036_v59, %v785_v7 }
  0xfe   : > { %v869_v5 = vpop.permute.xlu1 %868  ;;  %v1102_v35 = vsel %vm1080_vm8, %v1069_v27, %v822_v20  ;;  %v923_v20 = vsel %vm915_vm3, %v2362_v14, %v2685_v61 }
  0xff   : > { %v853_v36 = vpop.permute.xlu0 %852  ;;  %v1135_v0 = vsel %vm1113_vm9, %v1102_v35, %v869_v5 }
 0x100   : > { %794 = vrot.lane.b32.xlu1 %v2746_v62, %s2170_s8 }
 0x101   : > { %778 = vrot.lane.b32.xlu0 %v2282_v12, %s2170_s8  ;;  %s1613_s8 = sshll.u32 %s2935_s5, 4  ;;  %s2982_s8 = int_to_ptr.vmem [resolvable:$true] %s1613_s8 }
 0x102   : > { %v871_v39 = vpop.permute.xlu1 %870  ;;  %s2086_s18 = scalar_lea.vmem %s2982_s8, 2048 }
 0x103   : > { %v855_v18 = vpop.permute.xlu0 %854  ;;  %p2087_p12 = scmp.ne.s32.totalorder %s2982_s8, %s2086_s18 }
 0x104   : > { %829 = vrot.lane.b32.xlu1 %v2081_v53, %s2171_s9  ;;  %v1086_v53 = vsel %vm1080_vm8, %v1053_v40, %v806_v42 }
 0x105   : > { %813 = vrot.lane.b32.xlu0 %v2269_v2, %s2171_s9  ;;  %v1119_v50 = vsel %vm1113_vm9, %v1086_v53, %v853_v36  ;;  %v972_v2 = vsel %vm948_vm4, %v939_v52, %v2702_v49  ;;  %v956_v49 = vsel %vm948_vm4, %v923_v20, %v2705_v41  ;;  %p2088_p13 = pnand %p2087_p12, %p2236_p4 }
 0x106   : > { %v904_v6 = vpop.permute.xlu1 %903  ;;  %v1005_v10 = vsel %vm981_vm6, %v972_v2, %v2711_v26  ;;  %v989_v55 = vsel %vm981_vm6, %v956_v49, %v2713_v28 }
 0x107   : > { %v1168_v34 = vsel %vm1146_vm10, %v1135_v0, %v904_v6  ;;  %v888_v7 = vpop.permute.xlu0 %887  ;;  %v1038_v22 = vsel %vm1014_vm5, %v1005_v10, %v2723_v63  ;;  %v1022_v26 = vsel %vm1014_vm5, %v989_v55, %v2725_v4  ;;  %p2089_p0 = pneg %p2088_p13 }
 0x108   : > { %831 = vrot.lane.b32.xlu1 %v2749_v24, %s2171_s9  ;;  %1961 = vmatprep.mubr.msk.bf16.mxu1 %vm1206_vm11, %v1168_v34  ;;  %v1152_v47 = vsel %vm1146_vm10, %v1119_v50, %v888_v7  ;;  %v1071_v14 = vsel %vm1047_vm7, %v1038_v22, %v2734_v16  ;;  %v1055_v41 = vsel %vm1047_vm7, %v1022_v26, %v2736_v17  ;;  %v880_v17 = vrot.slane %v2749_v24, 1 }
 0x109   : > { %815 = vrot.lane.b32.xlu0 %v2085_v15, %s2171_s9  ;;  %1945 = vmatprep.mubr.msk.bf16.mxu0 %vm1206_vm11, %v1152_v47  ;;  %v1104_v5 = vsel %vm1080_vm8, %v1071_v14, %v824_v21  ;;  %v1088_v16 = vsel %vm1080_vm8, %v1055_v41, %v808_v57 }
 0x10a   : > { %v589_v42 = vpop.permute.xlu1 %588  ;;  %v1137_v63 = vsel %vm1113_vm9, %v1104_v5, %v871_v39  ;;  %v1121_v36 = vsel %vm1113_vm9, %v1088_v16, %v855_v18  ;;  %v882_v37 = vsel %vm596_vm0, %v880_v17, %v881_v25 }
 0x10b   : > { %v573_v61 = vpop.permute.xlu0 %572 }
 0x10c   : > { %876 = vrot.lane.b32.xlu1 %v728_v54, %s2172_s21  ;;  %v925_v52 = vsel %vm915_vm3, %v2423_v44, %v573_v61 }
 0x10d   : > { %860 = vrot.lane.b32.xlu0 %v2320_v51, %s2172_s21 }
 0x10e   : > { %v906_v28 = vpop.permute.xlu1 %905 }
 0x10f   : > { %v1170_v54 = vsel %vm1146_vm10, %v1137_v63, %v906_v28  ;;  %v890_v4 = vpop.permute.xlu0 %889 }
 0x110   : > { %878 = vrot.lane.b32.xlu1 %v847_v31, %s2172_s21  ;;  %1962 = vmatmul.mubr.msk.bf16.gmra.mrb[4].mxu1 %vm1206_vm11, %v1170_v54  ;;  %v1154_v21 = vsel %vm1146_vm10, %v1121_v36, %v890_v4 }
 0x111   : > { %862 = vrot.lane.b32.xlu0 %v2315_v48, %s2172_s21  ;;  %1946 = vmatmul.mubr.msk.bf16.gmra.mrb[4].mxu0 %vm1206_vm11, %v1154_v21  ;;  %s2090_s21 = sshll.u32 %s2174_s19, 4  ;;  %s2091_s21 = int_to_ptr.vmem [resolvable:$false] %s2090_s21 }
 0x112   : > { %v591_v51 = vpop.permute.xlu1 %590  ;;  %s2092_s23 = scalar_lea.vmem %s2091_s21, 4096  ;;  %p2093_p1 = scmp.lt.s32.totalorder %s2982_s8, %s2091_s21 }
 0x113   : > { %v575_v57 = vpop.permute.xlu0 %574  ;;  %v943_v55 = vsel %vm915_vm3, %v2452_v9, %v591_v51  ;;  %p2094_p2 = scmp.lt.s32.totalorder %s2092_s23, %s2086_s18 }
 0x114   : > { %911 = vrot.lane.b32.xlu1 %v2746_v62, %s2173_s27  ;;  %v927_v31 = vsel %vm915_vm3, %v2457_v13, %v575_v57 }
 0x115   : > { %895 = vrot.lane.b32.xlu0 %v2282_v12, %s2173_s27  ;;  %p2095_p3 = por %p2094_p2, %p2093_p1 }
 0x116   : > { %v670_v11 = vpop.permute.xlu1 %669 }
 0x117   : > { %v654_v33 = vpop.permute.xlu0 %653  ;;  %p2096_p5 = pnand %p2095_p3, %p2089_p0 }
 0x118   : > { %913 = vrot.lane.b32.xlu1 %v882_v37, %s2173_s27  ;;  %v958_v2 = vsel %vm948_vm4, %v925_v52, %v654_v33 }
 0x119   : > { %897 = vrot.lane.b32.xlu0 %v2294_v23, %s2173_s27  ;;  %v941_v23 = vsel %vm915_vm3, %v2418_v43, %v589_v42 }
 0x11a   : > { %v672_v48 = vpop.permute.xlu1 %671  ;;  %v974_v34 = vsel %vm948_vm4, %v941_v23, %v670_v11 }
 0x11b   : > { %v656_v24 = vpop.permute.xlu0 %655  ;;  %v976_v26 = vsel %vm948_vm4, %v943_v55, %v672_v48 }
 0x11c   : > { %v960_v28 = vsel %vm948_vm4, %v927_v31, %v656_v24 }
 0x11e   : > { %v707_v30 = vpop.permute.xlu1 %706 }
 0x11f   : > { %v691_v39 = vpop.permute.xlu0 %690  ;;  %v1007_v50 = vsel %vm981_vm6, %v974_v34, %v707_v30 }
 0x120   : > { %v991_v38 = vsel %vm981_vm6, %v958_v2, %v691_v39 }
 0x122   : > { %v709_v1 = vpop.permute.xlu1 %708 }
 0x123   : > { %v693_v59 = vpop.permute.xlu0 %692  ;;  %v1009_v41 = vsel %vm981_vm6, %v976_v26, %v709_v1 }
 0x124   : > { %v993_v16 = vsel %vm981_vm6, %v960_v28, %v693_v59 }
 0x126   : > { %v754_v32 = vpop.permute.xlu1 %753 }
 0x127   : > { %v738_v62 = vpop.permute.xlu0 %737  ;;  %v1040_v47 = vsel %vm1014_vm5, %v1007_v50, %v754_v32 }
 0x128   : > { %v1024_v43 = vsel %vm1014_vm5, %v991_v38, %v738_v62 }
 0x12a   : > { %v756_v27 = vpop.permute.xlu1 %755 }
 0x12b   : > { %v740_v18 = vpop.permute.xlu0 %739  ;;  %v1042_v9 = vsel %vm1014_vm5, %v1009_v41, %v756_v27 }
 0x12c   : > { %v1026_v4 = vsel %vm1014_vm5, %v993_v16, %v740_v18 }
 0x12e   : > { %v789_v46 = vpop.permute.xlu1 %788 }
 0x12f   : > { %v773_v19 = vpop.permute.xlu0 %772  ;;  %v1073_v8 = vsel %vm1047_vm7, %v1040_v47, %v789_v46 }
 0x130   : > { %v1057_v15 = vsel %vm1047_vm7, %v1024_v43, %v773_v19 }
 0x132   : > { %v791_v12 = vpop.permute.xlu1 %790 }
 0x133   : > { %v775_v35 = vpop.permute.xlu0 %774  ;;  %v1075_v54 = vsel %vm1047_vm7, %v1042_v9, %v791_v12 }
 0x134   : > { %v1059_v13 = vsel %vm1047_vm7, %v1026_v4, %v775_v35 }
 0x136   : > { %v826_v29 = vpop.permute.xlu1 %825 }
 0x137   : > { %v810_v60 = vpop.permute.xlu0 %809  ;;  %v1106_v10 = vsel %vm1080_vm8, %v1073_v8, %v826_v29 }
 0x138   : > { %v1090_v49 = vsel %vm1080_vm8, %v1057_v15, %v810_v60 }
 0x13a   : > { %v828_v40 = vpop.permute.xlu1 %827 }
 0x13b   : > { %v812_v0 = vpop.permute.xlu0 %811  ;;  %v1108_v21 = vsel %vm1080_vm8, %v1075_v54, %v828_v40 }
 0x13c   : > { %v1092_v51 = vsel %vm1080_vm8, %v1059_v13, %v812_v0 }
 0x13e   : > { %v873_v6 = vpop.permute.xlu1 %872 }
 0x13f   : > { %v857_v53 = vpop.permute.xlu0 %856  ;;  %v1139_v44 = vsel %vm1113_vm9, %v1106_v10, %v873_v6 }
 0x140   : > { %v1123_v14 = vsel %vm1113_vm9, %v1090_v49, %v857_v53 }
 0x142   : > { %v875_v7 = vpop.permute.xlu1 %874 }
 0x143   : > { %v859_v20 = vpop.permute.xlu0 %858  ;;  %v1141_v17 = vsel %vm1113_vm9, %v1108_v21, %v875_v7 }
 0x144   : > { %v1125_v37 = vsel %vm1113_vm9, %v1092_v51, %v859_v20 }
 0x146   : > { %v908_v42 = vpop.permute.xlu1 %907 }
 0x147   : > { %v1172_v22 = vsel %vm1146_vm10, %v1139_v44, %v908_v42  ;;  %v892_v61 = vpop.permute.xlu0 %891 }
 0x148   : > { %1965 = vmatprep.mubr.msk.bf16.mxu1 %vm1206_vm11, %v1172_v22  ;;  %v1156_v5 = vsel %vm1146_vm10, %v1123_v14, %v892_v61 }
 0x149   : > { %1949 = vmatprep.mubr.msk.bf16.mxu0 %vm1206_vm11, %v1156_v5 }
 0x14a   : > { %v593_v63 = vpop.permute.xlu1 %592 }
 0x14b   : > { %v577_v36 = vpop.permute.xlu0 %576  ;;  %v945_v50 = vsel %vm915_vm3, %v2518_v56, %v593_v63 }
 0x14c   : > { %v929_v47 = vsel %vm915_vm3, %v2524_v58, %v577_v36 }
 0x14e   : > { %v910_v25 = vpop.permute.xlu1 %909 }
 0x14f   : > { %v1174_v57 = vsel %vm1146_vm10, %v1141_v17, %v910_v25  ;;  %v894_v11 = vpop.permute.xlu0 %893 }
 0x150   : > { %1966 = vmatmul.mubr.msk.bf16.gmra.mrb[8].mxu1 %vm1206_vm11, %v1174_v57  ;;  %v1158_v33 = vsel %vm1146_vm10, %v1125_v37, %v894_v11  ;;  %v2922_v11 = vld [vmem:[%s3037_s2] ss:$0 sm:$0xff] }
 0x151   : > { %1950 = vmatmul.mubr.msk.bf16.gmra.mrb[8].mxu0 %vm1206_vm11, %v1158_v33 }
 0x152   : > { %v595_v48 = vpop.permute.xlu1 %594 }
 0x153   : > { %v579_v24 = vpop.permute.xlu0 %578  ;;  %v947_v10 = vsel %vm915_vm3, %v2580_v3, %v595_v48 }
 0x154   : > { %v931_v22 = vsel %vm915_vm3, %v2592_v45, %v579_v24 }
 0x156   : > { %v674_v30 = vpop.permute.xlu1 %673 }
 0x157   : > { %v658_v39 = vpop.permute.xlu0 %657  ;;  %v978_v2 = vsel %vm948_vm4, %v945_v50, %v674_v30 }
 0x158   : > { %v962_v20 = vsel %vm948_vm4, %v929_v47, %v658_v39 }
 0x15a   : > { %v676_v1 = vpop.permute.xlu1 %675 }
 0x15b   : > { %v660_v59 = vpop.permute.xlu0 %659  ;;  %v980_v42 = vsel %vm948_vm4, %v947_v10, %v676_v1 }
 0x15c   : > { %v964_v26 = vsel %vm948_vm4, %v931_v22, %v660_v59 }
 0x15e   : > { %v711_v32 = vpop.permute.xlu1 %710 }
 0x15f   : > { %v695_v62 = vpop.permute.xlu0 %694  ;;  %v1011_v38 = vsel %vm981_vm6, %v978_v2, %v711_v32 }
 0x160   : > { %v995_v15 = vsel %vm981_vm6, %v962_v20, %v695_v62 }
 0x162   : > { %v713_v27 = vpop.permute.xlu1 %712 }
 0x163   : > { %v697_v18 = vpop.permute.xlu0 %696  ;;  %v1013_v55 = vsel %vm981_vm6, %v980_v42, %v713_v27 }
 0x164   : > { %v997_v63 = vsel %vm981_vm6, %v964_v26, %v697_v18 }
 0x166   : > { %v758_v46 = vpop.permute.xlu1 %757 }
 0x167   : > { %v742_v19 = vpop.permute.xlu0 %741  ;;  %v1044_v43 = vsel %vm1014_vm5, %v1011_v38, %v758_v46 }
 0x168   : > { %v1028_v49 = vsel %vm1014_vm5, %v995_v15, %v742_v19 }
 0x16a   : > { %v760_v12 = vpop.permute.xlu1 %759 }
 0x16b   : > { %v744_v35 = vpop.permute.xlu0 %743  ;;  %v1046_v5 = vsel %vm1014_vm5, %v1013_v55, %v760_v12 }
 0x16c   : > { %v1030_v16 = vsel %vm1014_vm5, %v997_v63, %v744_v35 }
 0x16e   : > { %v793_v29 = vpop.permute.xlu1 %792 }
 0x16f   : > { %v777_v60 = vpop.permute.xlu0 %776  ;;  %v1077_v56 = vsel %vm1047_vm7, %v1044_v43, %v793_v29 }
 0x170   : > { %v1061_v14 = vsel %vm1047_vm7, %v1028_v49, %v777_v60 }
 0x172   : > { %v795_v40 = vpop.permute.xlu1 %794 }
 0x173   : > { %v779_v0 = vpop.permute.xlu0 %778  ;;  %v1079_v28 = vsel %vm1047_vm7, %v1046_v5, %v795_v40 }
 0x174   : > { %v1063_v4 = vsel %vm1047_vm7, %v1030_v16, %v779_v0 }
 0x176   : > { %v830_v6 = vpop.permute.xlu1 %829 }
 0x177   : > { %v814_v23 = vpop.permute.xlu0 %813  ;;  %v1110_v58 = vsel %vm1080_vm8, %v1077_v56, %v830_v6 }
 0x178   : > { %v1094_v31 = vsel %vm1080_vm8, %v1061_v14, %v814_v23 }
 0x17a   : > { %v832_v53 = vpop.permute.xlu1 %831 }
 0x17b   : > { %v816_v34 = vpop.permute.xlu0 %815  ;;  %v1112_v54 = vsel %vm1080_vm8, %v1079_v28, %v832_v53 }
 0x17c   : > { %v1096_v17 = vsel %vm1080_vm8, %v1063_v4, %v816_v34 }
 0x17e   : > { %v877_v52 = vpop.permute.xlu1 %876 }
 0x17f   : > { %v861_v7 = vpop.permute.xlu0 %860  ;;  %v1143_v3 = vsel %vm1113_vm9, %v1110_v58, %v877_v52 }
 0x180   : > { %v1127_v45 = vsel %vm1113_vm9, %v1094_v31, %v861_v7 }
 0x182   : > { %v879_v8 = vpop.permute.xlu1 %878 }
 0x183   : > { %v863_v44 = vpop.permute.xlu0 %862  ;;  %v1145_v21 = vsel %vm1113_vm9, %v1112_v54, %v879_v8 }
 0x184   : > { %v1129_v51 = vsel %vm1113_vm9, %v1096_v17, %v863_v44 }
 0x186   : > { %v912_v61 = vpop.permute.xlu1 %911 }
 0x187   : > { %v1176_v41 = vsel %vm1146_vm10, %v1143_v3, %v912_v61  ;;  %v896_v9 = vpop.permute.xlu0 %895 }
 0x188   : > { %1969 = vmatprep.mubr.msk.bf16.mxu1 %vm1206_vm11, %v1176_v41  ;;  %v1160_v36 = vsel %vm1146_vm10, %v1127_v45, %v896_v9 }
 0x189   : > { %1953 = vmatprep.mubr.msk.bf16.mxu0 %vm1206_vm11, %v1160_v36 }
 0x18a   : > { %v914_v13 = vpop.permute.xlu1 %913 }
 0x18b   : > { %v1178_v25 = vsel %vm1146_vm10, %v1145_v21, %v914_v13  ;;  %v898_v57 = vpop.permute.xlu0 %897 }
 0x18c   : > { %1970 = vmatmul.mubr.msk.bf16.gmra.mrb[12].mxu1 %vm1206_vm11, %v1178_v25  ;;  %v1162_v37 = vsel %vm1146_vm10, %v1129_v51, %v898_v57 }
 0x18d   : > { %1954 = vmatmul.mubr.msk.bf16.gmra.mrb[12].mxu0 %vm1206_vm11, %v1162_v37 }
 0x1a3   : > { %v1959_v33 = vpop.f32.mrb[0].mxu1 }
 0x1a4   : > { %v1350_v48 = vadd.f32 %v1959_v33, %v2922_v11  ;;  %v1341_v24 = vpop.f32.mrb[1].mxu1  ;;  %v1943_v30 = vpop.f32.mrb[0].mxu0 }
 0x1a5   : > { %v1342_v39 = vadd.f32 %v2922_v11, %v1341_v24  ;;  %v1960_v1 = vpop.f32.mrb[2].mxu1  ;;  %v1286_v59 = vadd.f32 %v1943_v30, %v2922_v11  ;;  %v1277_v32 = vpop.f32.mrb[1].mxu0 }
 0x1a6   : > { %v1353_v62 = vadd.f32 %v1960_v1, %v2922_v11  ;;  %v1344_v27 = vpop.f32.mrb[3].mxu1  ;;  %v1278_v18 = vadd.f32 %v2922_v11, %v1277_v32  ;;  %v1944_v46 = vpop.f32.mrb[2].mxu0  ;;  %v1422_v12 = vmax.f32 %v1350_v48, 0.0 }
 0x1a7   : > { %v1345_v19 = vadd.f32 %v2922_v11, %v1344_v27  ;;  %v1289_v35 = vadd.f32 %v1944_v46, %v2922_v11  ;;  %v1280_v60 = vpop.f32.mrb[3].mxu0  ;;  %v1420_v40 = vmax.f32 %v1342_v39, 0.0  ;;  %v1406_v23 = vmax.f32 %v1286_v59, 0.0 }
 0x1a8   : > { %v1423_v29 = vmax.f32 %v1353_v62, 0.0  ;;  %v1281_v0 = vadd.f32 %v2922_v11, %v1280_v60  ;;  %v1404_v52 = vmax.f32 %v1278_v18, 0.0 }
 0x1a9   : > { %v1421_v6 = vmax.f32 %v1345_v19, 0.0  ;;  %v1407_v53 = vmax.f32 %v1289_v35, 0.0 }
 0x1aa   : > { %v1869_v34 = vpack.c.bf16 %v1423_v29, %v1422_v12  ;;  %v1405_v50 = vmax.f32 %v1281_v0, 0.0 }
 0x1ab   : > { %v1864_v7 = vpack.c.bf16 %v1421_v6, %v1420_v40  ;;  %v1829_v2 = vpack.c.bf16 %v1407_v53, %v1406_v23 }
 0x1ac   : > { %1909 = vst [vmem:[%s2935_s5 + $0x48] sm:$0xff] %v1869_v34   ;;  %v1824_v47 = vpack.c.bf16 %v1405_v50, %v1404_v52 }
 0x1ad   : > { %1908 = vst [vmem:[%s2935_s5 + $0x40] sm:$0xff] %v1864_v7   ;;  %1901 = vst [vmem:[%s2935_s5 + $0x8] sm:$0xff] %v1829_v2  }
 0x1ae   : > { %1825 = vst [vmem:[%s2935_s5] sm:$0xff] %v1824_v47  }
 0x1e3   : > { %v1963_v38 = vpop.f32.mrb[4].mxu1 }
 0x1e4   : > { %v1366_v8 = vadd.f32 %v1963_v38, %v2922_v11  ;;  %v1357_v20 = vpop.f32.mrb[5].mxu1  ;;  %v1947_v43 = vpop.f32.mrb[4].mxu0 }
 0x1e5   : > { %v1358_v10 = vadd.f32 %v2922_v11, %v1357_v20  ;;  %v1964_v15 = vpop.f32.mrb[6].mxu1  ;;  %v1302_v56 = vadd.f32 %v1947_v43, %v2922_v11  ;;  %v1293_v44 = vpop.f32.mrb[5].mxu0 }
 0x1e6   : > { %v1369_v42 = vadd.f32 %v1964_v15, %v2922_v11  ;;  %v1360_v49 = vpop.f32.mrb[7].mxu1  ;;  %v1294_v58 = vadd.f32 %v2922_v11, %v1293_v44  ;;  %v1948_v22 = vpop.f32.mrb[6].mxu0  ;;  %v1426_v14 = vmax.f32 %v1366_v8, 0.0 }
 0x1e7   : > { %v1361_v55 = vadd.f32 %v2922_v11, %v1360_v49  ;;  %v1305_v3 = vadd.f32 %v1948_v22, %v2922_v11  ;;  %v1296_v26 = vpop.f32.mrb[7].mxu0  ;;  %v1424_v5 = vmax.f32 %v1358_v10, 0.0  ;;  %v1410_v63 = vmax.f32 %v1302_v56, 0.0 }
 0x1e8   : > { %v1427_v61 = vmax.f32 %v1369_v42, 0.0  ;;  %v1297_v31 = vadd.f32 %v2922_v11, %v1296_v26  ;;  %v1408_v9 = vmax.f32 %v1294_v58, 0.0 }
 0x1e9   : > { %v1425_v41 = vmax.f32 %v1361_v55, 0.0  ;;  %v1411_v28 = vmax.f32 %v1305_v3, 0.0 }
 0x1ea   : > { %v1879_v45 = vpack.c.bf16 %v1427_v61, %v1426_v14  ;;  %v1409_v16 = vmax.f32 %v1297_v31, 0.0 }
 0x1eb   : > { %v1874_v54 = vpack.c.bf16 %v1425_v41, %v1424_v5  ;;  %v1839_v36 = vpack.c.bf16 %v1411_v28, %v1410_v63 }
 0x1ec   : > { %1911 = vst [vmem:[%s2935_s5 + $0x58] sm:$0xff] %v1879_v45   ;;  %v1834_v4 = vpack.c.bf16 %v1409_v16, %v1408_v9 }
 0x1ed   : > { %1910 = vst [vmem:[%s2935_s5 + $0x50] sm:$0xff] %v1874_v54   ;;  %1903 = vst [vmem:[%s2935_s5 + $0x18] sm:$0xff] %v1839_v36  }
 0x1ee   : > { %1902 = vst [vmem:[%s2935_s5 + $0x10] sm:$0xff] %v1834_v4  }
 0x223   : > { %v1967_v21 = vpop.f32.mrb[8].mxu1 }
 0x224   : > { %v1382_v13 = vadd.f32 %v1967_v21, %v2922_v11  ;;  %v1373_v17 = vpop.f32.mrb[9].mxu1  ;;  %v1951_v25 = vpop.f32.mrb[8].mxu0 }
 0x225   : > { %v1374_v51 = vadd.f32 %v2922_v11, %v1373_v17  ;;  %v1968_v57 = vpop.f32.mrb[10].mxu1  ;;  %v1318_v37 = vadd.f32 %v1951_v25, %v2922_v11  ;;  %v1309_v33 = vpop.f32.mrb[9].mxu0 }
 0x226   : > { %v1385_v48 = vadd.f32 %v1968_v57, %v2922_v11  ;;  %v1376_v24 = vpop.f32.mrb[11].mxu1  ;;  %v1310_v30 = vadd.f32 %v2922_v11, %v1309_v33  ;;  %v1952_v39 = vpop.f32.mrb[10].mxu0  ;;  %v1430_v59 = vmax.f32 %v1382_v13, 0.0 }
 0x227   : > { %v1377_v1 = vadd.f32 %v2922_v11, %v1376_v24  ;;  %v1321_v32 = vadd.f32 %v1952_v39, %v2922_v11  ;;  %v1312_v27 = vpop.f32.mrb[11].mxu0  ;;  %v1428_v18 = vmax.f32 %v1374_v51, 0.0  ;;  %v1414_v12 = vmax.f32 %v1318_v37, 0.0 }
 0x228   : > { %v1431_v62 = vmax.f32 %v1385_v48, 0.0  ;;  %v1313_v46 = vadd.f32 %v2922_v11, %v1312_v27  ;;  %v1412_v60 = vmax.f32 %v1310_v30, 0.0 }
 0x229   : > { %v1429_v19 = vmax.f32 %v1377_v1, 0.0  ;;  %v1415_v35 = vmax.f32 %v1321_v32, 0.0 }
 0x22a   : > { %v1889_v29 = vpack.c.bf16 %v1431_v62, %v1430_v59  ;;  %v1413_v40 = vmax.f32 %v1313_v46, 0.0 }
 0x22b   : > { %v1884_v0 = vpack.c.bf16 %v1429_v19, %v1428_v18  ;;  %v1849_v6 = vpack.c.bf16 %v1415_v35, %v1414_v12 }
 0x22c   : > { %1913 = vst [vmem:[%s2935_s5 + $0x68] sm:$0xff] %v1889_v29   ;;  %v1844_v23 = vpack.c.bf16 %v1413_v40, %v1412_v60 }
 0x22d   : > { %1912 = vst [vmem:[%s2935_s5 + $0x60] sm:$0xff] %v1884_v0   ;;  %1905 = vst [vmem:[%s2935_s5 + $0x28] sm:$0xff] %v1849_v6  }
 0x22e   : > { %1904 = vst [vmem:[%s2935_s5 + $0x20] sm:$0xff] %v1844_v23  }
 0x25f   : > { %v1971_v53 = vpop.f32.mrb[12].mxu1 }
 0x260   : > { %v1398_v34 = vadd.f32 %v1971_v53, %v2922_v11  ;;  %v1389_v52 = vpop.f32.mrb[13].mxu1  ;;  %v1955_v50 = vpop.f32.mrb[12].mxu0 }
 0x261   : > { %v1390_v7 = vadd.f32 %v2922_v11, %v1389_v52  ;;  %v1972_v2 = vpop.f32.mrb[14].mxu1  ;;  %v1334_v47 = vadd.f32 %v1955_v50, %v2922_v11  ;;  %v1325_v38 = vpop.f32.mrb[13].mxu0 }
 0x262   : > { %v1401_v8 = vadd.f32 %v1972_v2, %v2922_v11  ;;  %v1392_v20 = vpop.f32.mrb[15].mxu1  ;;  %v1326_v43 = vadd.f32 %v2922_v11, %v1325_v38  ;;  %v1956_v10 = vpop.f32.mrb[14].mxu0  ;;  %v1434_v56 = vmax.f32 %v1398_v34, 0.0 }
 0x263   : > { %v1393_v15 = vadd.f32 %v2922_v11, %v1392_v20  ;;  %v1337_v44 = vadd.f32 %v1956_v10, %v2922_v11  ;;  %v1328_v49 = vpop.f32.mrb[15].mxu0  ;;  %v1432_v58 = vmax.f32 %v1390_v7, 0.0  ;;  %v1418_v14 = vmax.f32 %v1334_v47, 0.0 }
 0x264   : > { %v1435_v42 = vmax.f32 %v1401_v8, 0.0  ;;  %v1329_v22 = vadd.f32 %v2922_v11, %v1328_v49  ;;  %v1416_v26 = vmax.f32 %v1326_v43, 0.0 }
 0x265   : > { %v1433_v55 = vmax.f32 %v1393_v15, 0.0  ;;  %v1419_v3 = vmax.f32 %v1337_v44, 0.0 }
 0x266   : > { %v1899_v61 = vpack.c.bf16 %v1435_v42, %v1434_v56  ;;  %v1417_v5 = vmax.f32 %v1329_v22, 0.0 }
 0x267   : > { %v1894_v31 = vpack.c.bf16 %v1433_v55, %v1432_v58  ;;  %v1859_v41 = vpack.c.bf16 %v1419_v3, %v1418_v14 }
 0x268   : > { %1915 = vst [vmem:[%s2935_s5 + $0x78] sm:$0xff] %v1899_v61   ;;  %v1854_v11 = vpack.c.bf16 %v1417_v5, %v1416_v26 }
 0x269   : > { %1914 = vst [vmem:[%s2935_s5 + $0x70] sm:$0xff] %v1894_v31   ;;  %1907 = vst [vmem:[%s2935_s5 + $0x38] sm:$0xff] %v1859_v41  }
 0x26a   : > { %1906 = vst [vmem:[%s2935_s5 + $0x30] sm:$0xff] %v1854_v11  }
 0x26b   : > { %2099 = shalt.err (!%p2096_p5)
}
 0x26c   : > { %s2100_s26 = scalar_lea.hbm %s2979_s11, 2048  ;;  %s2104_s29 = scalar_lea.hbm %s3038_s3, 4096 }
 0x26d   : > { %p2101_p6 = scmp.ne.s32.totalorder %s2979_s11, %s2100_s26  ;;  %p2105_p10 = scmp.lt.u32.totalorder %s2979_s11, %s3038_s3 }
 0x26e   : > { %p2106_p11 = scmp.lt.u32.totalorder %s2104_s29, %s2100_s26  ;;  %p2108_p13 = scmp.lt.u32.totalorder %s2100_s26, %s2979_s11 }
 0x26f   : > { %p2102_p7 = pnand %p2101_p6, %p2236_p4 }
 0x270   : > { %p2107_p12 = por %p2106_p11, %p2105_p10 }
 0x271   : > { %p2103_p9 = pneg %p2102_p7 }
 0x272   : > { %p2109_p0 = por %p2108_p13, %p2107_p12 }
 0x274   : > { %p2110_p1 = pnand %p2109_p0, %p2103_p9 }
 0x276   : > { %2113 = shalt.err (!%p2110_p1)
}
 0x277   : > { %s2175_s5 = smov 64  }
 0x278   : > { %1982 = dma.vmem_to_hbm [thread:$0]  (%p2236_p4), %s2982_s8, 2048, %s2979_s11, %s2988_s15, %s2175_s5, %s2175_s5, %s2168_s6  }
 0x279 PF: > { %p1988_p2 = scmp.ge.s32.totalorder %s2164_s17, 2  ;;  %s1628_s7 = sand.u32 1, %s2144_s12  }
 0x27a   : > { %s1629_s9 = scalar_lea.sflag [#allocation3], %s1628_s7 }
 0x27b   : > { %p1985_p3 = pnand %p1988_p2, %p2243_p8 }
 0x27d   : > { %2139 = dma.done.wait (!%p1985_p3), %s1629_s9, 2048  }
 0x27e   : > { %2141 = vsyncadd (!%p1985_p3), %s1629_s9, 4294965248  ;;  %s16_s17 = sadd.s32 1, %s2164_s17   ;;  %s3041_s12 = smov %s2148_s13 }
 0x27f   : > { %p13_p5 = scmp.ge.s32.totalorder %s16_s17, 4   ;;  %s3042_s13 = smov %s2152_s14 }
 0x280   : > { %s3043_s14 = smov %s2249_s25  ;;  %s3044_s15 = smov %s2160_s16 }
 0x281   : > { %s3045_s16 = smov %s3047_s20  ;;  %15 = sbr.rel (!%p13_p5) target bundleno = 4 (0x4), region = 68 }
 0x288   :  { %1634 = vsyncpa [#allocation3], 1 }
 0x289   :  { %1636 = vsyncpa [#allocation3 + $0x1], 1 }

</bundles_post_ra>
